<compile_context>
chip_gen: v7x
topology: tpu7x:2x2x1
jax: 0.10.0
libtpu: 0.0.40
codegen_flags: <defaults>
</compile_context>

<pallas_src>
import functools

import jax
import jax.numpy as jnp
import numpy as np
from jax.experimental import pallas as pl
from jax.experimental.pallas import tpu as pltpu


def _round_up(x, m):
    return (x + m - 1) // m * m


def _vmem_limit_bytes():
    """Generation-aware scoped-VMEM budget (v5e/v6e: 128 MiB phys, v7x: 64 MiB)."""
    cap = 64 * 1024 * 1024  # conservative fallback == v7x per-core physical VMEM
    try:
        info_fn = getattr(pltpu, "get_tpu_info", None)
        if info_fn is not None:
            cap = int(info_fn().vmem_capacity_bytes)
    except Exception:
        pass
    # ~70% of physical, hard-capped at 100 MiB -> ~45 MiB on v7x, ~90 MiB on v5e/v6e.
    return int(min(int(cap * 0.70), 100 * 1024 * 1024))


def _choose_tiles(K_pad0, C_out_pad, M, vmem_limit):
    """Pick (tile_k, K_pad, tile_m, M_pad).

    Goals: stay under `vmem_limit` (double-buffered operands accounted),
    keep per-step patch DMAs >= ~2 MiB (HBM roofline), and keep >= 2 M-tiles
    so the 'parallel' M axis can shard across both v7x TensorCores.
    """
    # --- K tiling: cap the (double-buffered bf16) weight block at ~1/4 budget.
    max_tile_k = max(128, ((vmem_limit // 4) // (2 * C_out_pad)) // 128 * 128)
    n_k = -(-K_pad0 // max_tile_k)                       # cdiv
    tile_k = _round_up(-(-K_pad0 // n_k), 128)
    K_pad = tile_k * n_k

    # --- M tiling: fill the remaining budget, target >= ~2 MiB patch blocks.
    slack = 2 * 1024 * 1024
    rem = vmem_limit - 2 * (C_out_pad * tile_k * 2) - 4 * C_out_pad * 4 - slack
    per_col = 2 * (tile_k * 2) + 2 * (C_out_pad * 4)     # patches bf16 + out f32 (x2 bufs)
    tile_m_max = max(128, (rem // per_col) // 128 * 128)
    tile_m_target = max(256, ((2 * 1024 * 1024) // (tile_k * 2)) // 128 * 128)
    tile_m = min(tile_m_max, tile_m_target)

    m_ceil = _round_up(M, 128)
    tile_m = min(tile_m, m_ceil)
    # Keep >= 2 M-tiles for megacore sharding when the problem is big enough.
    if m_ceil >= 512 and _round_up(M, tile_m) // tile_m < 2:
        tile_m = min(tile_m_max, max(128, _round_up(m_ceil // 2, 128)))
    M_pad = _round_up(M, tile_m)
    return tile_k, K_pad, tile_m, M_pad


# ----------------------------- Pallas kernel ------------------------------ #
def _conv_bn_relu_kernel(w_ref, p_ref, scale_ref, shift_ref, o_ref, *, apply_relu):
    # w_ref:     (C_out_pad, tile_k)  bf16 reshaped conv-weight block
    # p_ref:     (tile_k, tile_m)     bf16 im2col patch block (K-major)
    # scale_ref: (C_out_pad, 1)       f32 folded BN scale = gamma/sqrt(var+eps)
    # shift_ref: (C_out_pad, 1)       f32 folded BN shift (= beta - mean*scale [+ bias*scale])
    # o_ref:     (C_out_pad, tile_m)  f32 lane-dense output block; resident
    #                                 across the K grid axis -> used as the accumulator.
    k = pl.program_id(1)

    @pl.when(k == 0)
    def _():
        o_ref[...] = jnp.zeros_like(o_ref)

    o_ref[...] += jnp.dot(w_ref[...], p_ref[...],
                          preferred_element_type=jnp.float32)

    @pl.when(k == pl.num_programs(1) - 1)
    def _():
        y = o_ref[...] * scale_ref[...] + shift_ref[...]
        if apply_relu:
            y = jnp.maximum(y, 0.0)
        o_ref[...] = y


def _fused_matmul_bn_relu(w2d_t, patches_t, scale, shift, *,
                          tile_k, tile_m, relu, vmem_limit):
    C_out_pad, K_pad = w2d_t.shape
    K_pad2, M_pad = patches_t.shape
    assert K_pad2 == K_pad
    assert M_pad % tile_m == 0 and K_pad % tile_k == 0
    assert tile_k % 128 == 0 and tile_m % 128 == 0 and C_out_pad % 16 == 0

    # Double-buffered operand / output blocks + BN affine must fit the budget.
    est_bytes = (2 * (tile_k * tile_m * 2)        # patches block (bf16)
                 + 2 * (C_out_pad * tile_k * 2)   # weight block (bf16)
                 + 2 * (C_out_pad * tile_m * 4)   # output/accumulator block (f32)
                 + 2 * (2 * C_out_pad * 4))       # BN scale/shift
    assert est_bytes <= vmem_limit, (
        f"tile_k={tile_k}, tile_m={tile_m} needs ~{est_bytes} B > {vmem_limit} B VMEM")

    flops = 2 * M_pad * K_pad * C_out_pad
    bytes_accessed = (patches_t.size * 2
                      + w2d_t.size * 2 * max(1, M_pad // tile_m)
                      + scale.size * 4 + shift.size * 4
                      + C_out_pad * M_pad * 4)

    kernel = functools.partial(_conv_bn_relu_kernel, apply_relu=relu)

    return pl.pallas_call(
        kernel,
        out_shape=jax.ShapeDtypeStruct((C_out_pad, M_pad), jnp.float32),
        grid_spec=pltpu.PrefetchScalarGridSpec(
            num_scalar_prefetch=0,
            grid=(M_pad // tile_m, K_pad // tile_k),      # reduction axis last
            in_specs=[
                pl.BlockSpec((C_out_pad, tile_k), lambda i, k: (0, k)),
                pl.BlockSpec((tile_k, tile_m), lambda i, k: (k, i)),
                pl.BlockSpec((C_out_pad, 1), lambda i, k: (0, 0)),
                pl.BlockSpec((C_out_pad, 1), lambda i, k: (0, 0)),
            ],
            out_specs=pl.BlockSpec((C_out_pad, tile_m), lambda i, k: (0, i)),
        ),
        compiler_params=pltpu.CompilerParams(
            dimension_semantics=("parallel", "arbitrary"),
            vmem_limit_bytes=int(vmem_limit),
        ),
        cost_estimate=pl.CostEstimate(
            flops=flops, transcendentals=0, bytes_accessed=bytes_accessed),
    )(w2d_t, patches_t, scale, shift)


# ----------------------------- BasicConv wrapper --------------------------- #
def basic_conv_forward(
    x_nchw,
    conv_weight,          # (C_out, C_in, KH, KW)
    bn_gamma=None, bn_beta=None, bn_mean=None, bn_var=None,
    *,
    conv_bias=None,
    stride=1, padding=0, dilation=1, groups=1, eps=1e-5,
    relu=True, bn=True,
):
    if groups != 1:
        raise NotImplementedError("groups != 1 is not supported (im2col path)")
    if bn and any(p is None for p in (bn_gamma, bn_beta, bn_mean, bn_var)):
        raise ValueError("bn=True requires gamma/beta/mean/var")

    N, C_in, H, W = x_nchw.shape
    C_out, C_in_w, KH, KW = conv_weight.shape
    assert C_in_w == C_in, (C_in_w, C_in)

    H_out = (H + 2 * padding - dilation * (KH - 1) - 1) // stride + 1
    W_out = (W + 2 * padding - dilation * (KW - 1) - 1) // stride + 1
    M = N * H_out * W_out
    K = C_in * KH * KW

    # --- TPU-friendly padded shapes + adaptive tiles --------------------- #
    C_out_pad = _round_up(C_out, 16)                 # bf16 sublane tiling (16,128)
    K_pad0 = _round_up(K, 128)
    vmem_limit = _vmem_limit_bytes()
    tile_k, K_pad, tile_m, M_pad = _choose_tiles(K_pad0, C_out_pad, M, vmem_limit)

    # --- glue: im2col directly in (K, M) layout, bf16 -------------------- #
    # K order is (kh, kw, c_in): the 9x-duplicated patch tensor is written
    # once by the stack and reshaped contiguously -- never transposed.  Only
    # the 1x-sized input is transposed/padded first.
    x_t = jnp.transpose(x_nchw, (1, 0, 2, 3)).astype(jnp.bfloat16)   # (C_in, N, H, W)
    x_pad = jnp.pad(x_t, ((0, 0), (0, 0), (padding, padding), (padding, padding)))
    slices = []
    for kh in range(KH):
        for kw in range(KW):
            h0 = kh * dilation
            w0 = kw * dilation
            slices.append(x_pad[:, :,
                                h0: h0 + (H_out - 1) * stride + 1: stride,
                                w0: w0 + (W_out - 1) * stride + 1: stride])
    patches_t = jnp.stack(slices, axis=0).reshape(K, M)              # (K, M) contiguous
    patches_t = jnp.pad(patches_t, ((0, K_pad - K), (0, M_pad - M)))

    # weight in matching K order (kh, kw, c_in)
    w2d_t = jnp.transpose(conv_weight, (0, 2, 3, 1)).reshape(C_out, K)
    w2d_t = jnp.pad(w2d_t.astype(jnp.bfloat16),
                    ((0, C_out_pad - C_out), (0, K_pad - K)))

    # --- fold BN (inference mode) + optional conv bias into per-channel affine
    if bn:
        scale = bn_gamma.astype(jnp.float32) / jnp.sqrt(bn_var.astype(jnp.float32) + eps)
        shift = bn_beta.astype(jnp.float32) - bn_mean.astype(jnp.float32) * scale
    else:
        scale = jnp.ones((C_out,), jnp.float32)
        shift = jnp.zeros((C_out,), jnp.float32)
    if conv_bias is not None:
        shift = shift + conv_bias.astype(jnp.float32) * scale
    scale = jnp.pad(scale, (0, C_out_pad - C_out)).reshape(C_out_pad, 1)
    shift = jnp.pad(shift, (0, C_out_pad - C_out)).reshape(C_out_pad, 1)

    out2d = _fused_matmul_bn_relu(w2d_t, patches_t, scale, shift,
                                  tile_k=tile_k, tile_m=tile_m,
                                  relu=relu, vmem_limit=vmem_limit)

    # (C_out_pad, M_pad) -> NCHW with a single cheap transpose of the true output.
    out = out2d[:C_out, :M].reshape(C_out, N, H_out, W_out).transpose(1, 0, 2, 3)
    return out


# ------------------------------- reference -------------------------------- #
def _reference(x, w, gamma, beta, mean, var, *, stride, padding, dilation, eps,
               relu=True):
    # bf16 inputs + f32 accumulation, matching the kernel's MXU precision.
    y = jax.lax.conv_general_dilated(
        x.astype(jnp.bfloat16), w.astype(jnp.bfloat16),
        window_strides=(stride, stride),
        padding=[(padding, padding), (padding, padding)],
        rhs_dilation=(dilation, dilation),
        dimension_numbers=("NCHW", "OIHW", "NCHW"),
        preferred_element_type=jnp.float32,
    )
    scale = (gamma / jnp.sqrt(var + eps)).reshape(1, -1, 1, 1)
    shift = (beta - mean * gamma / jnp.sqrt(var + eps)).reshape(1, -1, 1, 1)
    y = y * scale + shift
    if relu:
        y = jnp.maximum(y, 0.0)
    return y


# --------------------------------- main ------------------------------------ #
if __name__ == "__main__":
    # BasicConv(in_planes=4, out_planes=8, kernel_size=3, stride=1, padding=1)
    N, C_in, H, W = 2, 4, 16, 16
    C_out, KH, KW = 8, 3, 3
    eps = 1e-5

    key = jax.random.PRNGKey(0)
    k_x, k_w, k_g, k_b, k_m, k_v = jax.random.split(key, 6)

    x = jax.random.normal(k_x, (N, C_in, H, W), dtype=jnp.float32)
    conv_w = jax.random.normal(k_w, (C_out, C_in, KH, KW), dtype=jnp.float32) * 0.1
    gamma = 1.0 + 0.1 * jax.random.normal(k_g, (C_out,), dtype=jnp.float32)
    beta = 0.1 * jax.random.normal(k_b, (C_out,), dtype=jnp.float32)
    run_mean = 0.1 * jax.random.normal(k_m, (C_out,), dtype=jnp.float32)
    run_var = jnp.abs(1.0 + 0.1 * jax.random.normal(k_v, (C_out,), dtype=jnp.float32))

    configs = [
        dict(stride=1, padding=1, dilation=1, relu=True),    # default config
        dict(stride=1, padding=1, dilation=1, relu=False),   # relu=False variant
        dict(stride=2, padding=1, dilation=1, relu=True),    # exercises M padding
    ]
    for cfg in configs:
        out = basic_conv_forward(
            x, conv_w, gamma, beta, run_mean, run_var, eps=eps, **cfg)
        out = jax.block_until_ready(out)
        ref = jax.block_until_ready(
            _reference(x, conv_w, gamma, beta, run_mean, run_var, eps=eps, **cfg))
        assert out.shape == ref.shape, (out.shape, ref.shape)
        np.testing.assert_allclose(np.asarray(out), np.asarray(ref),
                                   rtol=2e-3, atol=2e-3)

    print("KERNEL_OK")
</pallas_src>

<mosaic_0001>
module attributes {stable_mosaic.version = 11 : i64} {
  func.func @_conv_bn_relu_kernel(%arg0: i32, %arg1: i32, %arg2: memref<16x128xbf16, #tpu.memory_space<vmem>>, %arg3: memref<128x256xbf16, #tpu.memory_space<vmem>>, %arg4: memref<16x1xf32, #tpu.memory_space<vmem>>, %arg5: memref<16x1xf32, #tpu.memory_space<vmem>>, %arg6: memref<16x256xf32, #tpu.memory_space<vmem>>) attributes {dimension_semantics = [#tpu.dimension_semantics<parallel>, #tpu.dimension_semantics<arbitrary>], iteration_bounds = array<i64: 2, 1>, scalar_prefetch = 0 : i64, scratch_operands = 0 : i64, tpu.core_type = #tpu.core_type<tc>, window_params = [{transform_indices = @transform_0, window_bounds = array<i64: 16, 128>}, {transform_indices = @transform_1, window_bounds = array<i64: 128, 256>}, {pipeline_mode = #tpu.pipeline_mode<synchronous>, transform_indices = @transform_2, window_bounds = array<i64: 16, 1>}, {pipeline_mode = #tpu.pipeline_mode<synchronous>, transform_indices = @transform_3, window_bounds = array<i64: 16, 1>}, {transform_indices = @transform_4, window_bounds = array<i64: 16, 256>}]} {
    %c0_i32 = arith.constant 0 : i32
    %0 = arith.cmpi eq, %arg1, %c0_i32 : i32
    %1 = arith.extui %0 : i1 to i32
    %c0_i32_0 = arith.constant 0 : i32
    %2 = arith.cmpi ne, %1, %c0_i32_0 : i32
    scf.if %2 {
      %cst_10 = arith.constant 0.000000e+00 : f32
      %12 = vector.broadcast %cst_10 : f32 to vector<16x256xf32>
      %c0_11 = arith.constant 0 : index
      %c0_12 = arith.constant 0 : index
      %13 = vector.load %arg6[%c0_11, %c0_12] : memref<16x256xf32, #tpu.memory_space<vmem>>, vector<16x256xf32>
      tpu.vector_store %arg6[%c0_11, %c0_12], %12 {strides = array<i32>} : memref<16x256xf32, #tpu.memory_space<vmem>>, vector<16x256xf32>,
    } else {
    }
    %c0 = arith.constant 0 : index
    %c0_1 = arith.constant 0 : index
    %3 = vector.load %arg6[%c0, %c0_1] : memref<16x256xf32, #tpu.memory_space<vmem>>, vector<16x256xf32>
    %c0_2 = arith.constant 0 : index
    %c0_3 = arith.constant 0 : index
    %4 = vector.load %arg2[%c0_2, %c0_3] : memref<16x128xbf16, #tpu.memory_space<vmem>>, vector<16x128xbf16>
    %c0_4 = arith.constant 0 : index
    %c0_5 = arith.constant 0 : index
    %5 = vector.load %arg3[%c0_4, %c0_5] : memref<128x256xbf16, #tpu.memory_space<vmem>>, vector<128x256xbf16>
    %cst = arith.constant dense<0.000000e+00> : vector<16x256xf32>
    %6 = tpu.matmul %4, %5, %cst {dimension_numbers = #tpu.dot_dimension_numbers<[1], [0], [0], [1], [0, 0, 1, 1], [], []>} : vector<16x128xbf16>, vector<128x256xbf16>, vector<16x256xf32> -> vector<16x256xf32>
    %7 = arith.addf %3, %6 : vector<16x256xf32>
    %c0_6 = arith.constant 0 : index
    %c0_7 = arith.constant 0 : index
    %8 = vector.load %arg6[%c0_6, %c0_7] : memref<16x256xf32, #tpu.memory_space<vmem>>, vector<16x256xf32>
    tpu.vector_store %arg6[%c0_6, %c0_7], %7 {strides = array<i32>} : memref<16x256xf32, #tpu.memory_space<vmem>>, vector<16x256xf32>,
    %c0_i32_8 = arith.constant 0 : i32
    %9 = arith.cmpi eq, %arg1, %c0_i32_8 : i32
    %10 = arith.extui %9 : i1 to i32
    %c0_i32_9 = arith.constant 0 : i32
    %11 = arith.cmpi ne, %10, %c0_i32_9 : i32
    scf.if %11 {
      %c0_10 = arith.constant 0 : index
      %c0_11 = arith.constant 0 : index
      %12 = vector.load %arg6[%c0_10, %c0_11] : memref<16x256xf32, #tpu.memory_space<vmem>>, vector<16x256xf32>
      %c0_12 = arith.constant 0 : index
      %c0_13 = arith.constant 0 : index
      %13 = vector.load %arg4[%c0_12, %c0_13] : memref<16x1xf32, #tpu.memory_space<vmem>>, vector<16x1xf32>
      %14 = vector.broadcast %13 : vector<16x1xf32> to vector<16x256xf32>
      %15 = arith.mulf %12, %14 : vector<16x256xf32>
      %c0_14 = arith.constant 0 : index
      %c0_15 = arith.constant 0 : index
      %16 = vector.load %arg5[%c0_14, %c0_15] : memref<16x1xf32, #tpu.memory_space<vmem>>, vector<16x1xf32>
      %17 = vector.broadcast %16 : vector<16x1xf32> to vector<16x256xf32>
      %18 = arith.addf %15, %17 : vector<16x256xf32>
      %cst_16 = arith.constant 0.000000e+00 : f32
      %19 = vector.broadcast %cst_16 : f32 to vector<16x256xf32>
      %20 = arith.maximumf %18, %19 : vector<16x256xf32>
      %c0_17 = arith.constant 0 : index
      %c0_18 = arith.constant 0 : index
      %21 = vector.load %arg6[%c0_17, %c0_18] : memref<16x256xf32, #tpu.memory_space<vmem>>, vector<16x256xf32>
      tpu.vector_store %arg6[%c0_17, %c0_18], %20 {strides = array<i32>} : memref<16x256xf32, #tpu.memory_space<vmem>>, vector<16x256xf32>,
    } else {
    }
    return
  }
  func.func @transform_0(%arg0: i32, %arg1: i32) -> (i32, i32) {
    %c0_i32 = arith.constant 0 : i32
    %c0_i32_0 = arith.constant 0 : i32
    return %c0_i32, %arg1 : i32, i32
  }
  func.func @transform_1(%arg0: i32, %arg1: i32) -> (i32, i32) {
    %c0_i32 = arith.constant 0 : i32
    return %arg1, %arg0 : i32, i32
  }
  func.func @transform_2(%arg0: i32, %arg1: i32) -> (i32, i32) {
    %c0_i32 = arith.constant 0 : i32
    %c0_i32_0 = arith.constant 0 : i32
    %c0_i32_1 = arith.constant 0 : i32
    return %c0_i32, %c0_i32_0 : i32, i32
  }
  func.func @transform_3(%arg0: i32, %arg1: i32) -> (i32, i32) {
    %c0_i32 = arith.constant 0 : i32
    %c0_i32_0 = arith.constant 0 : i32
    %c0_i32_1 = arith.constant 0 : i32
    return %c0_i32, %c0_i32_0 : i32, i32
  }
  func.func @transform_4(%arg0: i32, %arg1: i32) -> (i32, i32) {
    %c0_i32 = arith.constant 0 : i32
    %c0_i32_0 = arith.constant 0 : i32
    return %c0_i32, %arg0 : i32, i32
  }
}

</mosaic_0001>

<bundles_post_ra>
// kernel: tpu_custom_call.1
= control target key start
LH: loop header
LB: loop body
LE: loop exit
PB: predicated region body
PF: predicated region fallthrough
CT: control target
= control target key end

     0   :  { %9 = vsyncpa [#allocation3], 0  ;;  %s1068_s0 = inlined_call_operand.vmem [shape: bf16[16,128], index: 0, kind: input, shape index: {}]   ;;  %s1069_s1 = inlined_call_operand.hbm [shape: bf16[128,512], index: 1, kind: input, shape index: {}]   ;;  %s1070_s2 = inlined_call_operand.vmem [shape: f32[16,1], index: 2, kind: input, shape index: {}]   ;;  %s1071_s3 = inlined_call_operand.vmem [shape: f32[16,1], index: 3, kind: input, shape index: {}]   ;;  %s1072_s4 = inlined_call_operand.hbm [shape: f32[16,512], index: 4, kind: output, shape index: {}]  }
   0x1   :  { %11 = vsyncpa [#allocation3 + $0x1], 0 }
   0x2   :  { %12 = vsyncpa [#allocation4], 0 }
   0x3   :  { %14 = vsyncpa [#allocation4 + $0x1], 0  ;;  %s861_s15 = smov 0   ;;  %s863_s16 = smov 0  }
   0x4   :  { %s865_s17 = smov 0   ;;  %s867_s18 = smov 0  }
   0x5   :  { %s869_s19 = smov 0   ;;  %s871_s20 = smov 0  }
   0x6 LB: > { %s581_s21 = sadd.s32 4294967295, %s825_s20   ;;  %s582_s22 = sadd.s32 4294967294, %s825_s20   ;;  %s825_s20 = sphi %s871_s20, %s20_s20   ;;  %s821_s19 = sphi %s869_s19, %s1086_s19   ;;  %s817_s18 = sphi %s867_s18, %s1085_s18   ;;  %s813_s17 = sphi %s865_s17, %s1084_s17   ;;  %s809_s16 = sphi %s863_s16, %s1083_s16   ;;  %s805_s15 = sphi %s861_s15, %s1082_s15  }
   0x7   : > { %s32_s23 = sadd.s32 1, %s821_s19  ;;  %s67_s24 = sadd.s32 1, %s813_s17 }
   0x8   : > { %p34_p0 = scmp.ge.s32.totalorder %s32_s23, 2  ;;  %p74_p1 = scmp.ne.s32.totalorder %s813_s17, %s809_s16 }
   0x9   : > { %p75_p2 = scmp.eq.s32.totalorder %s825_s20, 0  ;;  %p80_p3 = scmp.ne.s32.totalorder %s809_s16, %s805_s15 }
   0xa   : > { %s1088_s23 = smov (%p34_p0, %s32_s23), 0  ;;  %p81_p5 = scmp.eq.s32.totalorder %s581_s21, 0 }
   0xb   : > { %p902_p4 = por %p75_p2, %p74_p1  ;;  %s63_s26 = ssub.s32 %s821_s19, %s1088_s23 }
   0xc   : > { %p146_p6 = scmp.eq.s32.totalorder %s581_s21, 1  ;;  %p65_p7 = scmp.eq.s32.totalorder %s63_s26, 0 }
   0xd   : > { %p908_p8 = por %p81_p5, %p80_p3  ;;  %p152_p10 = scmp.eq.s32.totalorder %s582_s22, 1 }
   0xe   : > { %p912_p9 = por %p146_p6, %p74_p1  ;;  %p628_p13 = scmp.lt.s32.totalorder %s825_s20, 2 }
   0xf   : > { %s917_s29 = scalar_select %p65_p7, %s813_s17, %s67_s24  }
  0x10   : > { %s1076_s28 = scalar_select %p912_p9, 1, 0 }
  0x11   : > { %p919_p11 = por %p152_p10, %p80_p3  ;;  %s185_s5 = sand.u32 1, %s813_s17  }
  0x12   : > { %s586_s6 = sshll.u32 %s185_s5, 7  ;;  %s614_s7 = sshll.u32 %s821_s19, 7 }
  0x13   : > { %s1077_s30 = scalar_select %p919_p11, 1, 0 }
  0x14   : > { %s930_s10 = scalar_lea.hbm %s1069_s1, %s614_s7  ;;  %s189_s11 = scalar_lea.vmem [#allocation2], %s586_s6 }
  0x15   : > { %s199_s12 = sshll.u32 %s189_s11, 4  ;;  %p936_p0 = pnand %p628_p13, %p902_p4  ;;  %s932_s12 = int_to_ptr.vmem [resolvable:$true] %s199_s12 }
  0x16   : > { %s940_s14 = scalar_lea.sflag [#allocation3], %s185_s5  ;;  %s713_s21 = scalar_lea.hbm %s930_s10, 2048 }
  0x17   : > { %p714_p1 = scmp.ne.s32.totalorder %s930_s10, %s713_s21  ;;  %p715_p2 = pneg %p936_p0 }
  0x18   : > { %s718_s25 = scalar_lea.hbm %s1069_s1, 4096  ;;  %p719_p4 = scmp.lt.u32.totalorder %s930_s10, %s1069_s1 }
  0x19   : > { %p716_p3 = pnand %p715_p2, %p714_p1  ;;  %p720_p6 = scmp.lt.u32.totalorder %s718_s25, %s713_s21 }
  0x1a   : > { %p722_p10 = scmp.lt.u32.totalorder %s713_s21, %s930_s10 }
  0x1b   : > { %p717_p5 = pneg %p716_p3  ;;  %p721_p7 = por %p720_p6, %p719_p4 }
  0x1d   : > { %p723_p13 = por %p722_p10, %p721_p7 }
  0x1f   : > { %p724_p12 = pnand %p723_p13, %p717_p5 }
  0x21   : > { %727 = shalt.err (!%p724_p12)
}
  0x22   : > { %s728_s5 = scalar_lea.vmem %s932_s12, 2048  ;;  %s827_s7 = smov [#allocation2]  }
  0x23   : > { %p729_p1 = scmp.ne.s32.totalorder %s932_s12, %s728_s5  ;;  %s733_s8 = sshll.u32 %s827_s7, 4  ;;  %s734_s8 = int_to_ptr.vmem [resolvable:$false] %s733_s8 }
  0x24   : > { %s735_s9 = scalar_lea.vmem %s734_s8, 4096  ;;  %p736_p9 = scmp.lt.s32.totalorder %s932_s12, %s734_s8 }
  0x25   : > { %p731_p3 = pnand %p729_p1, %p715_p2  ;;  %p737_p4 = scmp.lt.s32.totalorder %s735_s9, %s728_s5 }
  0x27   : > { %p732_p11 = pneg %p731_p3  ;;  %p738_p6 = por %p737_p4, %p736_p9 }
  0x29   : > { %p739_p7 = pnand %p738_p6, %p732_p11 }
  0x2b   : > { %742 = shalt.err (!%p739_p7)
}
  0x2c   : > { %s828_s11 = smov 256   ;;  %s829_s21 = smov 128  }
  0x2d   : > { %s830_s22 = smov 8   ;;  %p589_p12 = scmp.ge.s32.totalorder %s825_s20, 1 }
  0x2e   : > { %623 = dma.hbm_to_vmem [thread:$0]  (!%p936_p0), %s930_s10, 2048, %s932_s12, %s940_s14, %s828_s11, %s829_s21, %s830_s22  }
  0x2f   : > { %p207_p2 = scmp.lt.s32.totalorder %s825_s20, 3 }
  0x31   : > { %p208_p5 = pnand %p589_p12, %p207_p2 }
  0x32   : > { %s971_s24 = sand.u32 (!%p208_p5), 1, %s809_s16  }
  0x33   : > { %211 = sbr.rel (%p208_p5) target bundleno = 330 (0x14a), region = 36  ;;  %s590_s25 = sshll.u32 (!%p208_p5), %s971_s24, 7 }
  0x34   : > { %s214_s26 = scalar_lea.sflag (!%p208_p5), [#allocation3], %s971_s24  ;;  %s975_s6 = scalar_lea.vmem (!%p208_p5), [#allocation2], %s590_s25 }
  0x3a   : > { %796 = dma.done.wait (%p908_p8), %s214_s26, 2048  }
  0x3b   : > { %798 = vsyncadd (%p908_p8), %s214_s26, 4294965248  ;;  %v831_v0 = vmov 0   ;;  %v688_v1 = vld [vmem:[%s975_s6 + $0x4] ss:$8 sps:$4 sm:$0xff]   ;;  %v690_v2 = vld [vmem:[%s975_s6] ss:$8 sps:$4 sm:$0xff]  }
  0x3c   : > { %402 = vmatprep.mubr.bf16.mxu0 %v831_v0  ;;  %686 = vset.pattern.permute.xlu0 %v831_v0  ;;  %v691_v3 = vld [vmem:[%s975_s6 + $0x14] ss:$8 sps:$4 sm:$0xff]   ;;  %v693_v4 = vld [vmem:[%s975_s6 + $0x10] ss:$8 sps:$4 sm:$0xff]   ;;  %v694_v5 = vld [vmem:[%s975_s6 + $0x24] ss:$8 sps:$4 sm:$0xff]  }
  0x3d   : > { %687 = vset.pattern.permute.xlu1 %v831_v0  ;;  %370 = vmatprep.subr.bf16.mxu0 %v688_v1  ;;  %v696_v6 = vld [vmem:[%s975_s6 + $0x20] ss:$8 sps:$4 sm:$0xff]   ;;  %v697_v7 = vld [vmem:[%s975_s6 + $0x34] ss:$8 sps:$4 sm:$0xff]   ;;  %v699_v8 = vld [vmem:[%s975_s6 + $0x30] ss:$8 sps:$4 sm:$0xff]  }
  0x3e   : > { %371 = vmatpush1.bf16.msra.mxu0 %v690_v2  ;;  %v428_v9 = vld [vmem:[%s1070_s2] sm:$0xff]  ;;  %v429_v12 = vld [vmem:[%s1070_s2 + $0x8] sm:$0xff]  ;;  %v703_v15 = vld [vmem:[%s975_s6 + $0x54] ss:$8 sps:$4 sm:$0xff]   ;;  %s591_s21 = sshll.u32 %s971_s24, 5  ;;  %s615_s22 = sshll.u32 %s817_s18, 8 }
  0x3f   : > { %372 = vmatprep.subr.bf16.mxu0 %v691_v3  ;;  %v700_v10 = vld [vmem:[%s975_s6 + $0x44] ss:$8 sps:$4 sm:$0xff]   ;;  %432 = vperm.xlu0 %686, %v428_v9   ;;  %v702_v14 = vld [vmem:[%s975_s6 + $0x40] ss:$8 sps:$4 sm:$0xff]   ;;  %v705_v16 = vld [vmem:[%s975_s6 + $0x50] ss:$8 sps:$4 sm:$0xff]   ;;  %s1017_s10 = scalar_lea.hbm %s1072_s4, %s615_s22 }
  0x40   : > { %v444_v11 = vld [vmem:[%s1071_s3] sm:$0xff]  ;;  %v445_v13 = vld [vmem:[%s1071_s3 + $0x8] sm:$0xff]  ;;  %v709_v19 = vld [vmem:[%s975_s6 + $0x74] ss:$8 sps:$4 sm:$0xff]   ;;  %s245_s25 = scalar_lea.vmem [#allocation5], %s591_s21  ;;  %s469_s18 = scalar_lea.sflag [#allocation4], %s971_s24 }
  0x41   : > { %448 = vperm.xlu1 %687, %v444_v11   ;;  %v706_v17 = vld [vmem:[%s975_s6 + $0x64] ss:$8 sps:$4 sm:$0xff]   ;;  %v708_v18 = vld [vmem:[%s975_s6 + $0x60] ss:$8 sps:$4 sm:$0xff]   ;;  %v711_v20 = vld [vmem:[%s975_s6 + $0x70] ss:$8 sps:$4 sm:$0xff]  }
  0x42   : > { %373 = vmatpush1.bf16.msra.mxu0 %v693_v4  ;;  %v712_v21 = vld [vmem:[%s1068_s0] sm:$0xff]   ;;  %s482_s26 = sshll.u32 %s245_s25, 4  ;;  %p1079_p9 = scmp.ne.s32.totalorder %s1076_s28, 0  ;;  %s1019_s26 = int_to_ptr.vmem [resolvable:$true] %s482_s26 }
  0x43   : > { %374 = vmatprep.subr.bf16.mxu0 %v694_v5  ;;  %437 = vperm.xlu0 %686, %v429_v12   ;;  %s743_s12 = scalar_lea.vmem %s1019_s26, 512  ;;  %s832_s13 = smov [#allocation5]  }
  0x44   : > { %p744_p8 = scmp.ne.s32.totalorder %s1019_s26, %s743_s12  ;;  %s747_s14 = sshll.u32 %s832_s13, 4  ;;  %s748_s14 = int_to_ptr.vmem [resolvable:$false] %s747_s14 }
  0x45   : > { %453 = vperm.xlu1 %687, %v445_v13   ;;  %s749_s5 = scalar_lea.vmem %s748_s14, 1024  ;;  %p750_p10 = scmp.lt.s32.totalorder %s1019_s26, %s748_s14 }
  0x46   : > { %375 = vmatpush1.bf16.msra.mxu0 %v696_v6  ;;  %p745_p11 = pnand %p744_p8, %p1079_p9  ;;  %p751_p13 = scmp.lt.s32.totalorder %s749_s5, %s743_s12 }
  0x47   : > { %376 = vmatprep.subr.bf16.mxu0 %v697_v7 }
  0x48   : > { %p746_p0 = pneg %p745_p11  ;;  %p752_p1 = por %p751_p13, %p750_p10 }
  0x4a   : > { %377 = vmatpush1.bf16.msra.mxu0 %v699_v8  ;;  %p753_p3 = pnand %p752_p1, %p746_p0 }
  0x4b   : > { %378 = vmatprep.subr.bf16.mxu0 %v700_v10 }
  0x4e   : > { %379 = vmatpush1.bf16.msra.mxu0 %v702_v14 }
  0x4f   : > { %380 = vmatprep.subr.bf16.mxu0 %v703_v15 }
  0x52   : > { %381 = vmatpush1.bf16.msra.mxu0 %v705_v16 }
  0x53   : > { %382 = vmatprep.subr.bf16.mxu0 %v706_v17 }
  0x56   : > { %383 = vmatpush1.bf16.msra.mxu0 %v708_v18 }
  0x57   : > { %384 = vmatprep.subr.bf16.mxu0 %v709_v19 }
  0x5a   : > { %385 = vmatpush1.bf16.msra.mxu0 %v711_v20 }
  0x5d   : > { %403 = vmatmul.mubr.bf16.vlgmr.msra.gmra.mrb[0].mxu0 %v712_v21 }
  0xbe   : > { %v433_v22 = vpop.permute.xlu0 %432 }
  0xc0   : > { %v449_v24 = vpop.permute.xlu1 %448 }
  0xc2   : > { %v438_v30 = vpop.permute.xlu0 %437 }
  0xc4   : > { %v454_v35 = vpop.permute.xlu1 %453 }
 0x130   : > { %v404_v23 = vpop.f32.mrb[0].mxu0 }
 0x131   : > { %v406_v25 = vpop.f32.mrb[1].mxu0  ;;  %v440_v28 = vmul.f32 %v433_v22, %v404_v23 }
 0x132   : > { %v408_v26 = vpop.f32.mrb[2].mxu0  ;;  %v441_v29 = vmul.f32 %v433_v22, %v406_v25 }
 0x133   : > { %v410_v27 = vpop.f32.mrb[3].mxu0  ;;  %v456_v31 = vadd.f32 %v449_v24, %v440_v28  ;;  %v442_v32 = vmul.f32 %v438_v30, %v408_v26 }
 0x134   : > { %v457_v33 = vadd.f32 %v449_v24, %v441_v29  ;;  %v443_v34 = vmul.f32 %v438_v30, %v410_v27 }
 0x135   : > { %v460_v36 = vmax.f32 %v456_v31, 0.0  ;;  %v458_v37 = vadd.f32 %v454_v35, %v442_v32 }
 0x136   : > { %v461_v38 = vmax.f32 %v457_v33, 0.0  ;;  %v459_v39 = vadd.f32 %v454_v35, %v443_v34 }
 0x137   : > { %464 = vst [vmem:[%s245_s25] sm:$0xff] %v460_v36  ;;  %v462_v40 = vmax.f32 %v458_v37, 0.0 }
 0x138   : > { %465 = vst [vmem:[%s245_s25 + $0x8] sm:$0xff] %v461_v38  ;;  %v463_v41 = vmax.f32 %v459_v39, 0.0 }
 0x139   : > { %466 = vst [vmem:[%s245_s25 + $0x10] sm:$0xff] %v462_v40 }
 0x13a   : > { %467 = vst [vmem:[%s245_s25 + $0x18] sm:$0xff] %v463_v41 }
 0x13b   : > { %756 = shalt.err (!%p753_p3)
}
 0x13c   : > { %s757_s7 = scalar_lea.hbm %s1017_s10, 512  ;;  %s761_s11 = scalar_lea.hbm %s1072_s4, 1024 }
 0x13d   : > { %p758_p4 = scmp.ne.s32.totalorder %s1017_s10, %s757_s7  ;;  %p762_p12 = scmp.lt.u32.totalorder %s1017_s10, %s1072_s4 }
 0x13e   : > { %p763_p2 = scmp.lt.u32.totalorder %s761_s11, %s757_s7  ;;  %p765_p8 = scmp.lt.u32.totalorder %s757_s7, %s1017_s10 }
 0x13f   : > { %p759_p6 = pnand %p758_p4, %p1079_p9 }
 0x140   : > { %p764_p5 = por %p763_p2, %p762_p12 }
 0x141   : > { %p760_p7 = pneg %p759_p6 }
 0x142   : > { %p766_p11 = por %p765_p8, %p764_p5 }
 0x144   : > { %p767_p0 = pnand %p766_p11, %p760_p7 }
 0x146   : > { %770 = shalt.err (!%p767_p0)
}
 0x147   : > { %s833_s25 = smov 256   ;;  %s834_s6 = smov 512  }
 0x148   : > { %s835_s27 = smov 16  }
 0x149   : > { %618 = dma.vmem_to_hbm [thread:$0]  (%p1079_p9), %s1019_s26, 512, %s1017_s10, %s469_s18, %s833_s25, %s834_s6, %s835_s27  }
 0x14a PF: > { %s497_s12 = sand.u32 1, %s805_s15   ;;  %p1080_p10 = scmp.ne.s32.totalorder %s1077_s30, 0 }
 0x14b   : > { %p1081_p13 = scmp.ge.s32.totalorder %s825_s20, 2  ;;  %s498_s13 = scalar_lea.sflag [#allocation4], %s497_s12 }
 0x14d   : > { %p625_p1 = pnand %p1081_p13, %p1080_p10 }
 0x14f   : > { %800 = dma.done.wait (!%p625_p1), %s498_s13, 512  }
 0x150   : > { %802 = vsyncadd (!%p625_p1), %s498_s13, 4294966784  ;;  %s20_s20 = sadd.s32 1, %s825_s20   ;;  %s1082_s15 = smov %s809_s16 }
 0x151   : > { %p17_p3 = scmp.ge.s32.totalorder %s20_s20, 4   ;;  %s1083_s16 = smov %s813_s17 }
 0x152   : > { %s1084_s17 = smov %s917_s29  ;;  %s1085_s18 = smov %s821_s19 }
 0x153   : > { %s1086_s19 = smov %s1088_s23  ;;  %19 = sbr.rel (!%p17_p3) target bundleno = 6 (0x6), region = 92 }
 0x15a   :  { %503 = vsyncpa [#allocation3], 1 }
 0x15b   :  { %505 = vsyncpa [#allocation3 + $0x1], 1 }
 0x15c   :  { %506 = vsyncpa [#allocation4], 1 }
 0x15d   :  { %508 = vsyncpa [#allocation4 + $0x1], 1 }

</bundles_post_ra>
